<compile_context>
chip_gen: v5e
topology: v5e:2x2
jax: 0.10.0
libtpu: 0.0.40
codegen_flags: <defaults>
</compile_context>

<pallas_src>
import jax
import jax.numpy as jnp
from jax import lax
from jax.experimental import pallas as pl
from jax.experimental.pallas import tpu as pltpu

EPS = 1e-5
C_IN, C_MID, C_OUT = 144, 32, 192
VMEM_LIMIT = 32 * 1024 * 1024
MAX_PT = 2048


def _make_stats_kernel(PT, P, ragged):
    """Pass 1: z1 = W1s @ x (per tile) + accumulated column-sum and Gram of z1."""

    def _stats_kernel(x_ref, w1s_ref, z1_ref, gram_ref, sum_ref):
        i = pl.program_id(0)

        @pl.when(i == 0)
        def _():
            gram_ref[...] = jnp.zeros_like(gram_ref)
            sum_ref[...] = jnp.zeros_like(sum_ref)

        z1 = jnp.dot(w1s_ref[...], x_ref[...],
                     preferred_element_type=jnp.float32)          # (32, PT)
        z1_ref[...] = z1

        # Re-read from VMEM so the reductions stream from the output buffer
        # instead of keeping the whole (32, PT) tile live in vregs.
        z1s = z1_ref[...]
        if ragged:
            # Columns past the true P hold unspecified data in the last block;
            # zero them so sum/Gram stay exact (cheap VPU op, HBM-bound kernel).
            col = i * PT + lax.broadcasted_iota(jnp.int32, (1, PT), 1)
            z1s = jnp.where(col < P, z1s, 0.0)

        sum_ref[...] += jnp.sum(z1s, axis=-1, keepdims=True)       # (32, 1)
        gram_ref[...] += lax.dot_general(                          # z1 @ z1.T
            z1s, z1s, (((1,), (1,)), ((), ())),
            preferred_element_type=jnp.float32)

    return _stats_kernel


def _apply_kernel(z1_ref, w2o_ref, c_ref, o_ref):
    # Pass 2: out = W2o @ z1 + c     (z1_ref: (32, PT), w2o: (192, 32), c: (192, 1))
    o_ref[...] = jnp.dot(w2o_ref[...], z1_ref[...],
                         preferred_element_type=jnp.float32) + c_ref[...]


@jax.jit
def fused_forward(x34, x39, w1, g1, b1, w2, g2, b2):
    """x34: (N,144,H,W); x39: (1,144,1,1); w1: (32,144,1,1); w2: (192,32,1,1);
    g1,b1: (32,); g2,b2: (192,).  Returns (N,192,H,W)."""
    N, C, H, W = x34.shape
    assert C == C_IN
    P = N * H * W

    w1_2d = w1.reshape(C_MID, C_IN).astype(jnp.float32)
    w2_2d = w2.reshape(C_OUT, C_MID).astype(jnp.float32)

    # Channels-first flatten: (N,C,H,W) -> (C, N*H*W). Free reshape for N=1.
    x_cf = jnp.moveaxis(x34, 1, 0).reshape(C_IN, P).astype(jnp.float32)

    # Fold per-channel scale x39 into conv1 weight: W1 @ (s*x) == (W1*s) @ x.
    w1s = w1_2d * x39.reshape(1, C_IN).astype(jnp.float32)

    # Lane-dense P tile; no padding of the array itself (ragged tail handled
    # in-kernel / by Pallas OOB-write masking).
    P128 = -(-P // 128) * 128
    PT = min(P128, MAX_PT)
    n_tiles = -(-P // PT)
    ragged = (P % PT) != 0

    # ---- pass 1: z1 = W1s @ x, accumulated sum / Gram of z1 -----------------
    flops1 = 2 * C_MID * C_IN * P + 2 * C_MID * C_MID * P
    bytes1 = 4 * (C_IN * P + C_MID * C_IN + C_MID * P
                  + C_MID * C_MID + C_MID)
    z1, gram, sum1c = pl.pallas_call(
        _make_stats_kernel(PT, P, ragged),
        out_shape=(
            jax.ShapeDtypeStruct((C_MID, P), jnp.float32),
            jax.ShapeDtypeStruct((C_MID, C_MID), jnp.float32),
            jax.ShapeDtypeStruct((C_MID, 1), jnp.float32),
        ),
        grid_spec=pltpu.PrefetchScalarGridSpec(
            num_scalar_prefetch=0,
            grid=(n_tiles,),
            in_specs=[
                pl.BlockSpec((C_IN, PT), lambda i: (0, i)),
                pl.BlockSpec((C_MID, C_IN), lambda i: (0, 0)),
            ],
            out_specs=[
                pl.BlockSpec((C_MID, PT), lambda i: (0, i)),
                pl.BlockSpec((C_MID, C_MID), lambda i: (0, 0)),   # resident accumulator
                pl.BlockSpec((C_MID, 1), lambda i: (0, 0)),       # resident accumulator
            ],
        ),
        compiler_params=pltpu.CompilerParams(
            dimension_semantics=("arbitrary",),   # accumulators span the tile axis
            vmem_limit_bytes=VMEM_LIMIT),
        cost_estimate=pl.CostEstimate(
            flops=flops1, transcendentals=0, bytes_accessed=bytes1),
    )(x_cf, w1s)

    # ---- tiny (<=192x32) statistics math in plain JAX ------------------------
    Pf = jnp.float32(P)
    mean1 = sum1c[:, 0] / Pf                                         # (32,)
    var1 = jnp.maximum(jnp.diagonal(gram) / Pf - mean1 * mean1, 0.0)
    s1 = g1.reshape(C_MID) * lax.rsqrt(var1 + EPS)                   # BN1 gamma*invstd
    w2s = w2_2d * s1[None, :]                                        # (192, 32)
    gc = gram - Pf * jnp.outer(mean1, mean1)                         # centered Gram
    var2 = jnp.maximum(jnp.sum((w2s @ gc) * w2s, axis=1) / Pf, 0.0)  # (192,)
    a2 = g2.reshape(C_OUT) * lax.rsqrt(var2 + EPS)                   # BN2 gamma*invstd
    w2o = w2s * a2[:, None]                                          # fused conv2+BN1+BN2
    # BN1 beta (b1) and BN2's mean cancel exactly under BN2's centering.
    cvec = (b2.reshape(C_OUT) - w2o @ mean1)[:, None]                # (192, 1)

    # ---- pass 2: out = W2o @ z1 + c ------------------------------------------
    flops2 = 2 * C_OUT * C_MID * P + C_OUT * P
    bytes2 = 4 * (C_MID * P + C_OUT * C_MID + C_OUT + C_OUT * P)
    out_cf = pl.pallas_call(
        _apply_kernel,
        out_shape=jax.ShapeDtypeStruct((C_OUT, P), jnp.float32),
        grid_spec=pltpu.PrefetchScalarGridSpec(
            num_scalar_prefetch=0,
            grid=(n_tiles,),
            in_specs=[
                pl.BlockSpec((C_MID, PT), lambda i: (0, i)),
                pl.BlockSpec((C_OUT, C_MID), lambda i: (0, 0)),
                pl.BlockSpec((C_OUT, 1), lambda i: (0, 0)),
            ],
            out_specs=pl.BlockSpec((C_OUT, PT), lambda i: (0, i)),
        ),
        compiler_params=pltpu.CompilerParams(
            dimension_semantics=("parallel",),
            vmem_limit_bytes=VMEM_LIMIT),
        cost_estimate=pl.CostEstimate(
            flops=flops2, transcendentals=0, bytes_accessed=bytes2),
    )(z1, w2o, cvec)

    out = out_cf.reshape(C_OUT, N, H, W)
    return jnp.moveaxis(out, 0, 1)                                   # (N, 192, H, W)


def reference_forward(x34, x39, w1, g1, b1, w2, g2, b2):
    """Pure-JAX mirror of the PyTorch module (training-mode BN, biased variance)."""
    w1_2d = w1.reshape(C_MID, C_IN)
    w2_2d = w2.reshape(C_OUT, C_MID)
    x40 = x34 * x39
    z1 = jnp.einsum('oc,nchw->nohw', w1_2d, x40)
    m1 = jnp.mean(z1, axis=(0, 2, 3), keepdims=True)
    v1 = jnp.mean((z1 - m1) ** 2, axis=(0, 2, 3), keepdims=True)
    h1 = (z1 - m1) / jnp.sqrt(v1 + EPS) * g1.reshape(1, C_MID, 1, 1) \
        + b1.reshape(1, C_MID, 1, 1)
    z2 = jnp.einsum('oc,nchw->nohw', w2_2d, h1)
    m2 = jnp.mean(z2, axis=(0, 2, 3), keepdims=True)
    v2 = jnp.mean((z2 - m2) ** 2, axis=(0, 2, 3), keepdims=True)
    return (z2 - m2) / jnp.sqrt(v2 + EPS) * g2.reshape(1, C_OUT, 1, 1) \
        + b2.reshape(1, C_OUT, 1, 1)


if __name__ == "__main__":
    key = jax.random.PRNGKey(0)
    k = jax.random.split(key, 8)

    # Parameters in PyTorch layout: conv weights (Cout, Cin, 1, 1), BN params (C,).
    w1 = jax.random.normal(k[2], (C_MID, C_IN, 1, 1), dtype=jnp.float32) * 0.05
    w2 = jax.random.normal(k[3], (C_OUT, C_MID, 1, 1), dtype=jnp.float32) * 0.05
    g1 = 1.0 + 0.1 * jax.random.normal(k[4], (C_MID,), dtype=jnp.float32)
    b1 = 0.1 * jax.random.normal(k[5], (C_MID,), dtype=jnp.float32)
    g2 = 1.0 + 0.1 * jax.random.normal(k[6], (C_OUT,), dtype=jnp.float32)
    b2 = 0.1 * jax.random.normal(k[7], (C_OUT,), dtype=jnp.float32)

    x39 = jax.random.normal(k[1], (1, C_IN, 1, 1), dtype=jnp.float32)

    # Two spatial sizes: 16x16 exercises the aligned single-tile path,
    # 56x56 (the module's spec) exercises the multi-tile + ragged-tail path.
    for (H, W) in [(16, 16), (56, 56)]:
        N = 1
        x34 = jax.random.normal(k[0], (N, C_IN, H, W), dtype=jnp.float32)

        out = jax.block_until_ready(
            fused_forward(x34, x39, w1, g1, b1, w2, g2, b2))
        ref = jax.block_until_ready(
            reference_forward(x34, x39, w1, g1, b1, w2, g2, b2))

        assert out.shape == (N, C_OUT, H, W), out.shape
        max_err = float(jnp.max(jnp.abs(out - ref)))
        assert jnp.allclose(out, ref, atol=2e-4, rtol=2e-4), \
            f"mismatch at {H}x{W}, max|diff|={max_err}"

    print("KERNEL_OK")
</pallas_src>

<mosaic_0001>
module attributes {stable_mosaic.version = 11 : i64} {
  func.func @_stats_kernel(%arg0: i32, %arg1: memref<144x256xf32, #tpu.memory_space<vmem>>, %arg2: memref<32x144xf32, #tpu.memory_space<vmem>>, %arg3: memref<32x256xf32, #tpu.memory_space<vmem>>, %arg4: memref<32x32xf32, #tpu.memory_space<vmem>>, %arg5: memref<32x1xf32, #tpu.memory_space<vmem>>) attributes {dimension_semantics = [#tpu.dimension_semantics<arbitrary>], iteration_bounds = array<i64: 1>, scalar_prefetch = 0 : i64, scratch_operands = 0 : i64, tpu.core_type = #tpu.core_type<tc>, window_params = [{transform_indices = @transform_0, window_bounds = array<i64: 144, 256>}, {pipeline_mode = #tpu.pipeline_mode<synchronous>, transform_indices = @transform_1, window_bounds = array<i64: 32, 144>}, {transform_indices = @transform_2, window_bounds = array<i64: 32, 256>}, {pipeline_mode = #tpu.pipeline_mode<synchronous>, transform_indices = @transform_3, window_bounds = array<i64: 32, 32>}, {pipeline_mode = #tpu.pipeline_mode<synchronous>, transform_indices = @transform_4, window_bounds = array<i64: 32, 1>}]} {
    %c0_i32 = arith.constant 0 : i32
    %0 = arith.cmpi eq, %arg0, %c0_i32 : i32
    %1 = arith.extui %0 : i1 to i32
    %c0_i32_0 = arith.constant 0 : i32
    %2 = arith.cmpi ne, %1, %c0_i32_0 : i32
    scf.if %2 {
      %cst_18 = arith.constant 0.000000e+00 : f32
      %17 = vector.broadcast %cst_18 : f32 to vector<32x32xf32>
      %c0_19 = arith.constant 0 : index
      %c0_20 = arith.constant 0 : index
      %18 = vector.load %arg4[%c0_19, %c0_20] : memref<32x32xf32, #tpu.memory_space<vmem>>, vector<32x32xf32>
      tpu.vector_store %arg4[%c0_19, %c0_20], %17 {strides = array<i32>} : memref<32x32xf32, #tpu.memory_space<vmem>>, vector<32x32xf32>,
      %cst_21 = arith.constant 0.000000e+00 : f32
      %19 = vector.broadcast %cst_21 : f32 to vector<32x1xf32>
      %c0_22 = arith.constant 0 : index
      %c0_23 = arith.constant 0 : index
      %20 = vector.load %arg5[%c0_22, %c0_23] : memref<32x1xf32, #tpu.memory_space<vmem>>, vector<32x1xf32>
      tpu.vector_store %arg5[%c0_22, %c0_23], %19 {strides = array<i32>} : memref<32x1xf32, #tpu.memory_space<vmem>>, vector<32x1xf32>,
    } else {
    }
    %c0 = arith.constant 0 : index
    %c0_1 = arith.constant 0 : index
    %3 = vector.load %arg2[%c0, %c0_1] : memref<32x144xf32, #tpu.memory_space<vmem>>, vector<32x144xf32>
    %c0_2 = arith.constant 0 : index
    %c0_3 = arith.constant 0 : index
    %4 = vector.load %arg1[%c0_2, %c0_3] : memref<144x256xf32, #tpu.memory_space<vmem>>, vector<144x256xf32>
    %cst = arith.constant dense<0.000000e+00> : vector<32x256xf32>
    %5 = tpu.matmul %3, %4, %cst {dimension_numbers = #tpu.dot_dimension_numbers<[1], [0], [0], [1], [0, 0, 1, 1], [], []>} : vector<32x144xf32>, vector<144x256xf32>, vector<32x256xf32> -> vector<32x256xf32>
    %c0_4 = arith.constant 0 : index
    %c0_5 = arith.constant 0 : index
    %6 = vector.load %arg3[%c0_4, %c0_5] : memref<32x256xf32, #tpu.memory_space<vmem>>, vector<32x256xf32>
    tpu.vector_store %arg3[%c0_4, %c0_5], %5 {strides = array<i32>} : memref<32x256xf32, #tpu.memory_space<vmem>>, vector<32x256xf32>,
    %c0_6 = arith.constant 0 : index
    %c0_7 = arith.constant 0 : index
    %7 = vector.load %arg3[%c0_6, %c0_7] : memref<32x256xf32, #tpu.memory_space<vmem>>, vector<32x256xf32>
    %c0_8 = arith.constant 0 : index
    %c0_9 = arith.constant 0 : index
    %8 = vector.load %arg5[%c0_8, %c0_9] : memref<32x1xf32, #tpu.memory_space<vmem>>, vector<32x1xf32>
    %cst_10 = arith.constant dense<0.000000e+00> : vector<32xf32>
    %9 = vector.multi_reduction <add>, %7, %cst_10 [1] : vector<32x256xf32> to vector<32xf32>
    %10 = vector.shape_cast %9 : vector<32xf32> to vector<32x1xf32>
    %11 = arith.addf %8, %10 : vector<32x1xf32>
    %c0_11 = arith.constant 0 : index
    %c0_12 = arith.constant 0 : index
    %12 = vector.load %arg5[%c0_11, %c0_12] : memref<32x1xf32, #tpu.memory_space<vmem>>, vector<32x1xf32>
    tpu.vector_store %arg5[%c0_11, %c0_12], %11 {strides = array<i32>} : memref<32x1xf32, #tpu.memory_space<vmem>>, vector<32x1xf32>,
    %c0_13 = arith.constant 0 : index
    %c0_14 = arith.constant 0 : index
    %13 = vector.load %arg4[%c0_13, %c0_14] : memref<32x32xf32, #tpu.memory_space<vmem>>, vector<32x32xf32>
    %cst_15 = arith.constant dense<0.000000e+00> : vector<32x32xf32>
    %14 = tpu.matmul %7, %7, %cst_15 {dimension_numbers = #tpu.dot_dimension_numbers<[1], [1], [0], [0], [0, 0, 1, 0], [], []>} : vector<32x256xf32>, vector<32x256xf32>, vector<32x32xf32> -> vector<32x32xf32>
    %15 = arith.addf %13, %14 : vector<32x32xf32>
    %c0_16 = arith.constant 0 : index
    %c0_17 = arith.constant 0 : index
    %16 = vector.load %arg4[%c0_16, %c0_17] : memref<32x32xf32, #tpu.memory_space<vmem>>, vector<32x32xf32>
    tpu.vector_store %arg4[%c0_16, %c0_17], %15 {strides = array<i32>} : memref<32x32xf32, #tpu.memory_space<vmem>>, vector<32x32xf32>,
    return
  }
  func.func @transform_0(%arg0: i32) -> (i32, i32) {
    %c0_i32 = arith.constant 0 : i32
    %c0_i32_0 = arith.constant 0 : i32
    return %c0_i32, %arg0 : i32, i32
  }
  func.func @transform_1(%arg0: i32) -> (i32, i32) {
    %c0_i32 = arith.constant 0 : i32
    %c0_i32_0 = arith.constant 0 : i32
    %c0_i32_1 = arith.constant 0 : i32
    return %c0_i32, %c0_i32_0 : i32, i32
  }
  func.func @transform_2(%arg0: i32) -> (i32, i32) {
    %c0_i32 = arith.constant 0 : i32
    %c0_i32_0 = arith.constant 0 : i32
    return %c0_i32, %arg0 : i32, i32
  }
  func.func @transform_3(%arg0: i32) -> (i32, i32) {
    %c0_i32 = arith.constant 0 : i32
    %c0_i32_0 = arith.constant 0 : i32
    %c0_i32_1 = arith.constant 0 : i32
    return %c0_i32, %c0_i32_0 : i32, i32
  }
  func.func @transform_4(%arg0: i32) -> (i32, i32) {
    %c0_i32 = arith.constant 0 : i32
    %c0_i32_0 = arith.constant 0 : i32
    %c0_i32_1 = arith.constant 0 : i32
    return %c0_i32, %c0_i32_0 : i32, i32
  }
}

module attributes {stable_mosaic.version = 11 : i64} {
  func.func @_apply_kernel(%arg0: i32, %arg1: memref<32x256xf32, #tpu.memory_space<vmem>>, %arg2: memref<192x32xf32, #tpu.memory_space<vmem>>, %arg3: memref<192x1xf32, #tpu.memory_space<vmem>>, %arg4: memref<192x256xf32, #tpu.memory_space<vmem>>) attributes {dimension_semantics = [#tpu.dimension_semantics<parallel>], iteration_bounds = array<i64: 1>, scalar_prefetch = 0 : i64, scratch_operands = 0 : i64, tpu.core_type = #tpu.core_type<tc>, window_params = [{transform_indices = @transform_0, window_bounds = array<i64: 32, 256>}, {pipeline_mode = #tpu.pipeline_mode<synchronous>, transform_indices = @transform_1, window_bounds = array<i64: 192, 32>}, {pipeline_mode = #tpu.pipeline_mode<synchronous>, transform_indices = @transform_2, window_bounds = array<i64: 192, 1>}, {transform_indices = @transform_3, window_bounds = array<i64: 192, 256>}]} {
    %c0 = arith.constant 0 : index
    %c0_0 = arith.constant 0 : index
    %0 = vector.load %arg2[%c0, %c0_0] : memref<192x32xf32, #tpu.memory_space<vmem>>, vector<192x32xf32>
    %c0_1 = arith.constant 0 : index
    %c0_2 = arith.constant 0 : index
    %1 = vector.load %arg1[%c0_1, %c0_2] : memref<32x256xf32, #tpu.memory_space<vmem>>, vector<32x256xf32>
    %cst = arith.constant dense<0.000000e+00> : vector<192x256xf32>
    %2 = tpu.matmul %0, %1, %cst {dimension_numbers = #tpu.dot_dimension_numbers<[1], [0], [0], [1], [0, 0, 1, 1], [], []>} : vector<192x32xf32>, vector<32x256xf32>, vector<192x256xf32> -> vector<192x256xf32>
    %c0_3 = arith.constant 0 : index
    %c0_4 = arith.constant 0 : index
    %3 = vector.load %arg3[%c0_3, %c0_4] : memref<192x1xf32, #tpu.memory_space<vmem>>, vector<192x1xf32>
    %4 = vector.broadcast %3 : vector<192x1xf32> to vector<192x256xf32>
    %5 = arith.addf %2, %4 : vector<192x256xf32>
    %c0_5 = arith.constant 0 : index
    %c0_6 = arith.constant 0 : index
    %6 = vector.load %arg4[%c0_5, %c0_6] : memref<192x256xf32, #tpu.memory_space<vmem>>, vector<192x256xf32>
    tpu.vector_store %arg4[%c0_5, %c0_6], %5 {strides = array<i32>} : memref<192x256xf32, #tpu.memory_space<vmem>>, vector<192x256xf32>,
    return
  }
  func.func @transform_0(%arg0: i32) -> (i32, i32) {
    %c0_i32 = arith.constant 0 : i32
    %c0_i32_0 = arith.constant 0 : i32
    return %c0_i32, %arg0 : i32, i32
  }
  func.func @transform_1(%arg0: i32) -> (i32, i32) {
    %c0_i32 = arith.constant 0 : i32
    %c0_i32_0 = arith.constant 0 : i32
    %c0_i32_1 = arith.constant 0 : i32
    return %c0_i32, %c0_i32_0 : i32, i32
  }
  func.func @transform_2(%arg0: i32) -> (i32, i32) {
    %c0_i32 = arith.constant 0 : i32
    %c0_i32_0 = arith.constant 0 : i32
    %c0_i32_1 = arith.constant 0 : i32
    return %c0_i32, %c0_i32_0 : i32, i32
  }
  func.func @transform_3(%arg0: i32) -> (i32, i32) {
    %c0_i32 = arith.constant 0 : i32
    %c0_i32_0 = arith.constant 0 : i32
    return %c0_i32, %arg0 : i32, i32
  }
}

</mosaic_0001>

<bundles_post_ra>
// kernel: sub.5
= control target key start
LH: loop header
LB: loop body
LE: loop exit
PB: predicated region body
PF: predicated region fallthrough
CT: control target
= control target key end

     0   :  { %s34_s0 = inlined_call_operand.vmem [shape: f32[192], index: 0, kind: input, shape index: {}]   ;;  %s35_s1 = inlined_call_operand.vmem [shape: f32[192], index: 1, kind: input, shape index: {}]   ;;  %s36_s2 = inlined_call_operand.vmem [shape: f32[192], index: 2, kind: output, shape index: {}]  }
   0x1   :  { %v3_v0 = vld [vmem:[%s34_s0] sm:$0x3] }
   0x2   :  { %v4_v1 = vld [vmem:[%s35_s1] sm:$0x3] }
   0x3   :  { %v7_v2 = vsub.f32 %v3_v0, %v4_v1 }
   0x5   :  { %9 = vst [vmem:[%s36_s2] sm:$0x3] %v7_v2 }

// kernel: fused_forward.2
= control target key start
LH: loop header
LB: loop body
LE: loop exit
PB: predicated region body
PF: predicated region fallthrough
CT: control target
= control target key end

     0   :  { %vm72_vm0 = vcmask 130048   ;;  %vm23_vm1 = vcmask 7168   ;;  %vm18_vm2 = vcmask 261120   ;;  %s612_s0 = inlined_call_operand.vmem [shape: f32[144,256], index: 0, kind: input, shape index: {}]   ;;  %s613_s1 = inlined_call_operand.vmem [shape: f32[32,144], index: 1, kind: input, shape index: {}]   ;;  %s614_s2 = inlined_call_operand.vmem [shape: f32[32,256], index: 2, kind: output, shape index: {0}]   ;;  %s615_s4 = inlined_call_operand.vmem [shape: f32[32,1], index: 4, kind: output, shape index: {2}]   ;;  %s616_s3 = inlined_call_operand.vmem [shape: f32[32,32], index: 3, kind: output, shape index: {1}]  }
   0x1   :  { %v66_v0 = vld [vmem:[%s612_s0 + $0xf0] sm:$0xff]  ;;  %v67_v1 = vld [vmem:[%s612_s0 + $0xf8] sm:$0xff]  ;;  %v64_v2 = vld [vmem:[%s612_s0 + $0xe0] sm:$0xff] }
   0x2   :  { %85 = vmatpush.msra.mxu0 %v66_v0  ;;  %143 = vmatpush.msra.mxu2 %v67_v1  ;;  %v65_v3 = vld [vmem:[%s612_s0 + $0xe8] sm:$0xff]  ;;  %v62_v4 = vld [vmem:[%s612_s0 + $0xd0] sm:$0xff]  ;;  %v63_v5 = vld [vmem:[%s612_s0 + $0xd8] sm:$0xff] }
   0x3   :  { %v60_v6 = vld [vmem:[%s612_s0 + $0xc0] sm:$0xff]  ;;  %v61_v7 = vld [vmem:[%s612_s0 + $0xc8] sm:$0xff]  ;;  %v58_v8 = vld [vmem:[%s612_s0 + $0xb0] sm:$0xff] }
   0x4   :  { %86 = vmatpush.msra.mxu0 %v64_v2  ;;  %144 = vmatpush.msra.mxu2 %v65_v3  ;;  %v59_v9 = vld [vmem:[%s612_s0 + $0xb8] sm:$0xff]  ;;  %v56_v10 = vld [vmem:[%s612_s0 + $0xa0] sm:$0xff]  ;;  %v57_v11 = vld [vmem:[%s612_s0 + $0xa8] sm:$0xff] }
   0x5   :  { %v70_v12 = vld [vmem:[%s612_s0 + $0x110] sm:$0xff]  ;;  %v55_v14 = vld [vmem:[%s612_s0 + $0x98] sm:$0xff]  ;;  %v68_v16 = vld [vmem:[%s612_s0 + $0x100] sm:$0xff] }
   0x6   :  { %87 = vmatpush.msra.mxu0 %v62_v4  ;;  %145 = vmatpush.msra.mxu2 %v63_v5  ;;  %v54_v13 = vld [vmem:[%s612_s0 + $0x90] sm:$0xff]  ;;  %v71_v15 = vld [vmem:[%s612_s0 + $0x118] sm:$0xff]  ;;  %v69_v17 = vld [vmem:[%s612_s0 + $0x108] sm:$0xff] }
   0x7   :  { %128 = vmatpush.msra.mxu1 %v70_v12  ;;  %v52_v18 = vld [vmem:[%s612_s0 + $0x80] sm:$0xff]  ;;  %v53_v19 = vld [vmem:[%s612_s0 + $0x88] sm:$0xff]  ;;  %186 = vmatpush.msra.mxu3 %v71_v15  ;;  %v50_v21 = vld [vmem:[%s612_s0 + $0x70] sm:$0xff] }
   0x8   :  { %88 = vmatpush.msra.mxu0 %v60_v6  ;;  %146 = vmatpush.msra.mxu2 %v61_v7  ;;  %v29_v20 = vld [vmem:[%s613_s1 + $0x8] sm:$0xff]  ;;  %v51_v22 = vld [vmem:[%s612_s0 + $0x78] sm:$0xff]  ;;  %v48_v23 = vld [vmem:[%s612_s0 + $0x60] sm:$0xff] }
   0x9   :  { %129 = vmatpush.msra.mxu1 %v68_v16  ;;  %187 = vmatpush.msra.mxu3 %v69_v17  ;;  %v49_v24 = vld [vmem:[%s612_s0 + $0x68] sm:$0xff]  ;;  %v46_v25 = vld [vmem:[%s612_s0 + $0x50] sm:$0xff]  ;;  %v47_v26 = vld [vmem:[%s612_s0 + $0x58] sm:$0xff] }
   0xa   :  { %89 = vmatpush.msra.mxu0 %v58_v8  ;;  %147 = vmatpush.msra.mxu2 %v59_v9  ;;  %v31_v27 = vld [vmem:[%s613_s1 + $0x18] sm:$0xff]  ;;  %v44_v28 = vld [vmem:[%s612_s0 + $0x40] sm:$0xff]  ;;  %v45_v29 = vld [vmem:[%s612_s0 + $0x48] sm:$0xff]  ;;  %v334_v8 = vmov 0.0  }
   0xb   :  { %325 = vmatmul.msk.f32.vlgmr.msra.gmra.mxu1 %vm72_vm0, %v29_v20  ;;  %329 = vmatmul.msk.f32.vlgmr.msra.gmra.mxu3 %vm72_vm0, %v29_v20  ;;  %v42_v30 = vld [vmem:[%s612_s0 + $0x30] sm:$0xff]  ;;  %v43_v31 = vld [vmem:[%s612_s0 + $0x38] sm:$0xff]  ;;  %v40_v32 = vld [vmem:[%s612_s0 + $0x20] sm:$0xff]  ;;  %24 = vst.msk [vmem:[%s615_s4] sm:$0xff] %vm23_vm1, %v334_v8 }
   0xc   :  { %90 = vmatpush.msra.mxu0 %v56_v10  ;;  %148 = vmatpush.msra.mxu2 %v57_v11  ;;  %v41_v33 = vld [vmem:[%s612_s0 + $0x28] sm:$0xff]  ;;  %v38_v34 = vld [vmem:[%s612_s0 + $0x10] sm:$0xff]  ;;  %v39_v35 = vld [vmem:[%s612_s0 + $0x18] sm:$0xff]  ;;  %25 = vst.msk [vmem:[%s615_s4 + $0x8] sm:$0xff] %vm23_vm1, %v334_v8 }
   0xd   :  { %v33_v36 = vld [vmem:[%s613_s1 + $0x28] sm:$0xff]  ;;  %v36_v37 = vld [vmem:[%s612_s0] sm:$0xff]  ;;  %v35_v40 = vld [vmem:[%s613_s1 + $0x38] sm:$0xff]  ;;  %26 = vst.msk [vmem:[%s615_s4 + $0x10] sm:$0xff] %vm23_vm1, %v334_v8 }
   0xe   :  { %91 = vmatpush.msra.mxu0 %v54_v13  ;;  %149 = vmatpush.msra.mxu2 %v55_v14  ;;  %v37_v38 = vld [vmem:[%s612_s0 + $0x8] sm:$0xff]  ;;  %v28_v39 = vld [vmem:[%s613_s1] sm:$0xff]  ;;  %v30_v41 = vld [vmem:[%s613_s1 + $0x10] sm:$0xff]  ;;  %27 = vst.msk [vmem:[%s615_s4 + $0x18] sm:$0xff] %vm23_vm1, %v334_v8 }
   0xf   :  { %v32_v42 = vld [vmem:[%s613_s1 + $0x20] sm:$0xff]  ;;  %v34_v43 = vld [vmem:[%s613_s1 + $0x30] sm:$0xff]  ;;  %19 = vst.msk [vmem:[%s616_s3] sm:$0xff] %vm18_vm2, %v334_v8 }
  0x10   :  { %92 = vmatpush.msra.mxu0 %v52_v18  ;;  %150 = vmatpush.msra.mxu2 %v53_v19  ;;  %20 = vst.msk [vmem:[%s616_s3 + $0x8] sm:$0xff] %vm18_vm2, %v334_v8 }
  0x11   :  { %21 = vst.msk [vmem:[%s616_s3 + $0x10] sm:$0xff] %vm18_vm2, %v334_v8 }
  0x12   :  { %93 = vmatpush.msra.mxu0 %v50_v21  ;;  %151 = vmatpush.msra.mxu2 %v51_v22  ;;  %v217_v9 = vld [vmem:[%s615_s4] sm:$0xff]  ;;  %22 = vst.msk [vmem:[%s616_s3 + $0x18] sm:$0xff] %vm18_vm2, %v334_v8 }
  0x13   :  { %326 = vmatmul.msk.f32.gmra.mxu1 %vm72_vm0, %v31_v27  ;;  %330 = vmatmul.msk.f32.gmra.mxu3 %vm72_vm0, %v31_v27  ;;  %v218_v12 = vld [vmem:[%s615_s4 + $0x8] sm:$0xff] }
  0x14   :  { %94 = vmatpush.msra.mxu0 %v48_v23  ;;  %152 = vmatpush.msra.mxu2 %v49_v24  ;;  %v219_v15 = vld [vmem:[%s615_s4 + $0x10] sm:$0xff] }
  0x15   :  { %v220_v18 = vld [vmem:[%s615_s4 + $0x18] sm:$0xff] }
  0x16   :  { %95 = vmatpush.msra.mxu0 %v46_v25  ;;  %153 = vmatpush.msra.mxu2 %v47_v26  ;;  %v242_v22 = vld [vmem:[%s616_s3] sm:$0xff] }
  0x17   :  { %v243_v27 = vld [vmem:[%s616_s3 + $0x8] sm:$0xff] }
  0x18   :  { %96 = vmatpush.msra.mxu0 %v44_v28  ;;  %154 = vmatpush.msra.mxu2 %v45_v29 }
  0x1a   :  { %97 = vmatpush.msra.mxu0 %v42_v30  ;;  %155 = vmatpush.msra.mxu2 %v43_v31 }
  0x1b   :  { %327 = vmatmul.msk.f32.gmra.mxu1 %vm72_vm0, %v33_v36  ;;  %331 = vmatmul.msk.f32.gmra.mxu3 %vm72_vm0, %v33_v36 }
  0x1c   :  { %98 = vmatpush.msra.mxu0 %v40_v32  ;;  %156 = vmatpush.msra.mxu2 %v41_v33  ;;  %v244_v32 = vld [vmem:[%s616_s3 + $0x10] sm:$0xff] }
  0x1e   :  { %99 = vmatpush.msra.mxu0 %v38_v34  ;;  %157 = vmatpush.msra.mxu2 %v39_v35 }
  0x20   :  { %100 = vmatpush.msra.mxu0 %v36_v37  ;;  %158 = vmatpush.msra.mxu2 %v37_v38  ;;  %v245_v37 = vld [vmem:[%s616_s3 + $0x18] sm:$0xff] }
  0x21   :  { %101 = vmatmul.f32.vlgmr.msra.gmra.mxu0 %v28_v39  ;;  %159 = vmatmul.f32.vlgmr.msra.gmra.mxu2 %v28_v39 }
  0x23   :  { %328 = vmatmul.msk.f32.gmra.mxu1 %vm72_vm0, %v35_v40  ;;  %332 = vmatmul.msk.f32.gmra.mxu3 %vm72_vm0, %v35_v40 }
  0x29   :  { %104 = vmatmul.f32.gmra.mxu0 %v30_v41  ;;  %162 = vmatmul.f32.gmra.mxu2 %v30_v41 }
  0x31   :  { %107 = vmatmul.f32.gmra.mxu0 %v32_v42  ;;  %165 = vmatmul.f32.gmra.mxu2 %v32_v42 }
  0x39   :  { %110 = vmatmul.f32.gmra.mxu0 %v34_v43  ;;  %168 = vmatmul.f32.gmra.mxu2 %v34_v43 }
  0x88   :  { %v131_v44 = vpop.f32.mrf.mxu1 }
  0x8e   :  { %v189_v45 = vpop.f32.mrf.mxu3 }
  0x90   :  { %v134_v48 = vpop.f32.mrf.mxu1 }
  0x96   :  { %v192_v52 = vpop.f32.mrf.mxu3 }
  0x98   :  { %v137_v55 = vpop.f32.mrf.mxu1 }
  0x9e   :  { %v102_v46 = vpop.f32.mrf.mxu0  ;;  %v195_v61 = vpop.f32.mrf.mxu3 }
  0x9f   :  { %v132_v47 = vadd.f32 %v131_v44, %v102_v46 }
  0xa0   :  { %v140_v63 = vpop.f32.mrf.mxu1 }
  0xa1   :  { %201 = vst [vmem:[%s614_s2] sm:$0xff] %v132_v47 }
  0xa4   :  { %v160_v49 = vpop.f32.mrf.mxu2 }
  0xa5   :  { %v190_v50 = vadd.f32 %v189_v45, %v160_v49 }
  0xa6   :  { %v105_v51 = vpop.f32.mrf.mxu0  ;;  %v198_v4 = vpop.f32.mrf.mxu3 }
  0xa7   :  { %202 = vst [vmem:[%s614_s2 + $0x8] sm:$0xff] %v190_v50  ;;  %v135_v53 = vadd.f32 %v134_v48, %v105_v51  ;;  %v221_v54 = vadd.f32 %v190_v50, %v132_v47 }
  0xa9   :  { %203 = vst [vmem:[%s614_s2 + $0x10] sm:$0xff] %v135_v53  ;;  %222 = vadd.xlane.f32.xlu0 %v221_v54 }
  0xac   :  { %v163_v56 = vpop.f32.mrf.mxu2 }
  0xad   :  { %v193_v57 = vadd.f32 %v192_v52, %v163_v56 }
  0xae   :  { %v108_v58 = vpop.f32.mrf.mxu0 }
  0xaf   :  { %204 = vst [vmem:[%s614_s2 + $0x18] sm:$0xff] %v193_v57  ;;  %v138_v59 = vadd.f32 %v137_v55, %v108_v58  ;;  %v224_v60 = vadd.f32 %v193_v57, %v135_v53 }
  0xb1   :  { %205 = vst [vmem:[%s614_s2 + $0x20] sm:$0xff] %v138_v59  ;;  %225 = vadd.xlane.f32.xlu0 %v224_v60 }
  0xb4   :  { %v166_v62 = vpop.f32.mrf.mxu2 }
  0xb5   :  { %v196_v0 = vadd.f32 %v195_v61, %v166_v62 }
  0xb6   :  { %v111_v1 = vpop.f32.mrf.mxu0 }
  0xb7   :  { %206 = vst [vmem:[%s614_s2 + $0x28] sm:$0xff] %v196_v0  ;;  %v141_v2 = vadd.f32 %v140_v63, %v111_v1  ;;  %v227_v3 = vadd.f32 %v196_v0, %v138_v59 }
  0xb9   :  { %207 = vst [vmem:[%s614_s2 + $0x30] sm:$0xff] %v141_v2  ;;  %228 = vadd.xlane.f32.xlu1 %v227_v3  ;;  %258 = vmatpush.xpose.msrb.mxu1 %v141_v2 }
  0xbc   :  { %v169_v5 = vpop.f32.mrf.mxu2 }
  0xbd   :  { %v199_v6 = vadd.f32 %v198_v4, %v169_v5  ;;  %259 = vmatpush.xpose.msrb.mxu1 %v138_v59 }
  0xbf   :  { %208 = vst [vmem:[%s614_s2 + $0x38] sm:$0xff] %v199_v6  ;;  %287 = vmatpush.xpose.msrb.mxu3 %v199_v6  ;;  %v230_v7 = vadd.f32 %v199_v6, %v141_v2 }
  0xc1   :  { %260 = vmatpush.xpose.msrb.mxu1 %v135_v53  ;;  %231 = vadd.xlane.f32.xlu1 %v230_v7 }
  0xc3   :  { %288 = vmatpush.xpose.msrb.mxu3 %v196_v0 }
  0xc5   :  { %261 = vmatpush.xpose.msrb.mxu1 %v132_v47 }
  0xc7   :  { %289 = vmatpush.xpose.msrb.mxu3 %v193_v57 }
  0xc8   :  { %262 = vmatmul.f32.vlgmr.msrb.gmra.mxu1 %v132_v47 }
  0xcb   :  { %290 = vmatpush.xpose.msrb.mxu3 %v190_v50 }
  0xce   :  { %291 = vmatmul.f32.vlgmr.msrb.gmra.mxu3 %v190_v50 }
  0xd0   :  { %265 = vmatmul.f32.gmra.mxu1 %v135_v53 }
  0xd6   :  { %294 = vmatmul.f32.gmra.mxu3 %v193_v57 }
  0xd8   :  { %268 = vmatmul.f32.gmra.mxu1 %v138_v59 }
  0xde   :  { %297 = vmatmul.f32.gmra.mxu3 %v196_v0 }
  0xe0   :  { %271 = vmatmul.f32.gmra.mxu1 %v141_v2 }
  0xe6   :  { %300 = vmatmul.f32.gmra.mxu3 %v199_v6 }
 0x11c   :  { %v223_v10 = vpop.xlane.xlu0 %222 }
 0x11d   :  { %v233_v11 = vadd.f32 %v223_v10, %v217_v9 }
 0x11f   :  { %238 = vst.msk [vmem:[%s615_s4] sm:$0xff] %vm23_vm1, %v233_v11 }
 0x124   :  { %v226_v13 = vpop.xlane.xlu0 %225 }
 0x125   :  { %v234_v14 = vadd.f32 %v226_v13, %v218_v12 }
 0x127   :  { %239 = vst.msk [vmem:[%s615_s4 + $0x8] sm:$0xff] %vm23_vm1, %v234_v14 }
 0x12c   :  { %v229_v16 = vpop.xlane.xlu1 %228 }
 0x12d   :  { %v235_v17 = vadd.f32 %v229_v16, %v219_v15 }
 0x12f   :  { %240 = vst.msk [vmem:[%s615_s4 + $0x10] sm:$0xff] %vm23_vm1, %v235_v17 }
 0x134   :  { %v232_v19 = vpop.xlane.xlu1 %231 }
 0x135   :  { %v236_v20 = vadd.f32 %v232_v19, %v220_v18 }
 0x137   :  { %241 = vst.msk [vmem:[%s615_s4 + $0x18] sm:$0xff] %vm23_vm1, %v236_v20 }
 0x145   :  { %v263_v21 = vpop.f32.mrf.mxu1 }
 0x14d   :  { %v266_v26 = vpop.f32.mrf.mxu1 }
 0x151   :  { %v292_v23 = vpop.f32.mrf.mxu3 }
 0x152   :  { %v293_v24 = vadd.f32 %v292_v23, %v263_v21 }
 0x154   :  { %v304_v25 = vadd.f32 %v293_v24, %v242_v22 }
 0x155   :  { %v269_v31 = vpop.f32.mrf.mxu1 }
 0x156   :  { %309 = vst.msk [vmem:[%s616_s3] sm:$0xff] %vm18_vm2, %v304_v25 }
 0x159   :  { %v295_v28 = vpop.f32.mrf.mxu3 }
 0x15a   :  { %v296_v29 = vadd.f32 %v295_v28, %v266_v26 }
 0x15c   :  { %v305_v30 = vadd.f32 %v296_v29, %v243_v27 }
 0x15d   :  { %v272_v36 = vpop.f32.mrf.mxu1 }
 0x15e   :  { %310 = vst.msk [vmem:[%s616_s3 + $0x8] sm:$0xff] %vm18_vm2, %v305_v30 }
 0x161   :  { %v298_v33 = vpop.f32.mrf.mxu3 }
 0x162   :  { %v299_v34 = vadd.f32 %v298_v33, %v269_v31 }
 0x164   :  { %v306_v35 = vadd.f32 %v299_v34, %v244_v32 }
 0x166   :  { %311 = vst.msk [vmem:[%s616_s3 + $0x10] sm:$0xff] %vm18_vm2, %v306_v35 }
 0x169   :  { %v301_v38 = vpop.f32.mrf.mxu3 }
 0x16a   :  { %v302_v39 = vadd.f32 %v301_v38, %v272_v36 }
 0x16c   :  { %v307_v40 = vadd.f32 %v302_v39, %v245_v37 }
 0x16e   :  { %312 = vst.msk [vmem:[%s616_s3 + $0x18] sm:$0xff] %vm18_vm2, %v307_v40 }

// kernel: fused_forward.3
= control target key start
LH: loop header
LB: loop body
LE: loop exit
PB: predicated region body
PF: predicated region fallthrough
CT: control target
= control target key end

     0   :  { %v553_v0 = vmov 0   ;;  %vm190_vm0 = vcmask 261120   ;;  %s966_s2 = inlined_call_operand.vmem [shape: f32[192,1], index: 2, kind: input, shape index: {}]   ;;  %s967_s0 = inlined_call_operand.vmem [shape: f32[32,256], index: 0, kind: input, shape index: {}]   ;;  %s968_s1 = inlined_call_operand.vmem [shape: f32[192,32], index: 1, kind: input, shape index: {}]   ;;  %s969_s3 = inlined_call_operand.vmem [shape: f32[192,256], index: 3, kind: output, shape index: {}]  }
   0x1   :  { %551 = vset.pattern.permute.xlu1 %v553_v0  ;;  %550 = vset.pattern.permute.xlu0 %v553_v0  ;;  %v48_v1 = vld [vmem:[%s966_s2 + $0x10] sm:$0xff]  ;;  %v46_v2 = vld [vmem:[%s966_s2] sm:$0xff]  ;;  %v45_v4 = vld [vmem:[%s967_s0 + $0x38] sm:$0xff] }
   0x2   :  { %v44_v3 = vld [vmem:[%s967_s0 + $0x30] sm:$0xff]  ;;  %82 = vperm.xlu1 %551, %v48_v1   ;;  %72 = vperm.xlu0 %550, %v46_v2   ;;  %v42_v5 = vld [vmem:[%s967_s0 + $0x20] sm:$0xff]  ;;  %v43_v6 = vld [vmem:[%s967_s0 + $0x28] sm:$0xff] }
   0x3   :  { %275 = vmatpush.msra.mxu0 %v44_v3  ;;  %541 = vmatpush.msra.mxu2 %v44_v3  ;;  %v40_v7 = vld [vmem:[%s967_s0 + $0x10] sm:$0xff]  ;;  %v41_v8 = vld [vmem:[%s967_s0 + $0x18] sm:$0xff]  ;;  %v38_v9 = vld [vmem:[%s967_s0] sm:$0xff] }
   0x4   :  { %364 = vmatpush.msra.mxu1 %v45_v4  ;;  %545 = vmatpush.msra.mxu3 %v45_v4  ;;  %v39_v10 = vld [vmem:[%s967_s0 + $0x8] sm:$0xff]  ;;  %v14_v11 = vld [vmem:[%s968_s1] sm:$0xff]  ;;  %v49_v13 = vld [vmem:[%s966_s2 + $0x18] sm:$0xff] }
   0x5   :  { %276 = vmatpush.msra.mxu0 %v42_v5  ;;  %542 = vmatpush.msra.mxu2 %v42_v5  ;;  %v26_v12 = vld [vmem:[%s968_s1 + $0x60] sm:$0xff]  ;;  %v47_v14 = vld [vmem:[%s966_s2 + $0x8] sm:$0xff]  ;;  %v53_v18 = vld [vmem:[%s966_s2 + $0x38] sm:$0xff] }
   0x6   :  { %365 = vmatpush.msra.mxu1 %v43_v6  ;;  %546 = vmatpush.msra.mxu3 %v43_v6  ;;  %v50_v15 = vld [vmem:[%s966_s2 + $0x20] sm:$0xff]  ;;  %v15_v16 = vld [vmem:[%s968_s1 + $0x8] sm:$0xff]  ;;  %v52_v19 = vld [vmem:[%s966_s2 + $0x30] sm:$0xff] }
   0x7   :  { %277 = vmatpush.msra.mxu0 %v40_v7  ;;  %543 = vmatpush.msra.mxu2 %v40_v7  ;;  %v27_v17 = vld [vmem:[%s968_s1 + $0x68] sm:$0xff]  ;;  %v16_v21 = vld [vmem:[%s968_s1 + $0x10] sm:$0xff]  ;;  %v54_v25 = vld [vmem:[%s966_s2 + $0x40] sm:$0xff] }
   0x8   :  { %366 = vmatpush.msra.mxu1 %v41_v8  ;;  %547 = vmatpush.msra.mxu3 %v41_v8  ;;  %v51_v20 = vld [vmem:[%s966_s2 + $0x28] sm:$0xff]  ;;  %v28_v22 = vld [vmem:[%s968_s1 + $0x70] sm:$0xff]  ;;  %v17_v26 = vld [vmem:[%s968_s1 + $0x18] sm:$0xff] }
   0x9   :  { %278 = vmatpush.msra.mxu0 %v38_v9  ;;  %544 = vmatpush.msra.mxu2 %v38_v9  ;;  %v56_v23 = vld [vmem:[%s966_s2 + $0x50] sm:$0xff]  ;;  %v55_v24 = vld [vmem:[%s966_s2 + $0x48] sm:$0xff]  ;;  %v29_v27 = vld [vmem:[%s968_s1 + $0x78] sm:$0xff] }
   0xa   :  { %367 = vmatpush.msra.mxu1 %v39_v10  ;;  %548 = vmatpush.msra.mxu3 %v39_v10  ;;  %v59_v28 = vld [vmem:[%s966_s2 + $0x68] sm:$0xff]  ;;  %v58_v29 = vld [vmem:[%s966_s2 + $0x60] sm:$0xff]  ;;  %v57_v30 = vld [vmem:[%s966_s2 + $0x58] sm:$0xff] }
   0xb   :  { %493 = vmatmul.msk.f32.vlgmr.msra.gmra.mxu0 %vm190_vm0, %v14_v11  ;;  %505 = vmatmul.msk.f32.vlgmr.msra.gmra.mxu2 %vm190_vm0, %v26_v12  ;;  %v18_v31 = vld [vmem:[%s968_s1 + $0x20] sm:$0xff]  ;;  %v61_v34 = vld [vmem:[%s966_s2 + $0x78] sm:$0xff]  ;;  %v60_v35 = vld [vmem:[%s966_s2 + $0x70] sm:$0xff] }
   0xc   :  { %517 = vmatmul.msk.f32.vlgmr.msra.gmra.mxu1 %vm190_vm0, %v14_v11  ;;  %529 = vmatmul.msk.f32.vlgmr.msra.gmra.mxu3 %vm190_vm0, %v26_v12  ;;  %v30_v32 = vld [vmem:[%s968_s1 + $0x80] sm:$0xff]  ;;  %v19_v36 = vld [vmem:[%s968_s1 + $0x28] sm:$0xff]  ;;  %v65_v38 = vld [vmem:[%s966_s2 + $0x98] sm:$0xff] }
   0xd   :  { %87 = vperm.xlu1 %551, %v49_v13   ;;  %77 = vperm.xlu0 %550, %v47_v14   ;;  %v62_v33 = vld [vmem:[%s966_s2 + $0x80] sm:$0xff]  ;;  %v31_v37 = vld [vmem:[%s968_s1 + $0x88] sm:$0xff]  ;;  %v64_v39 = vld [vmem:[%s966_s2 + $0x90] sm:$0xff] }
   0xe   :  { %552 = vset.pattern.permute.xlu2 %v553_v0  ;;  %v63_v40 = vld [vmem:[%s966_s2 + $0x88] sm:$0xff]  ;;  %v20_v41 = vld [vmem:[%s968_s1 + $0x30] sm:$0xff]  ;;  %v66_v45 = vld [vmem:[%s966_s2 + $0xa0] sm:$0xff] }
   0xf   :  { %92 = vperm.xlu2 %552, %v50_v15   ;;  %v32_v42 = vld [vmem:[%s968_s1 + $0x90] sm:$0xff]  ;;  %v67_v44 = vld [vmem:[%s966_s2 + $0xa8] sm:$0xff]  ;;  %v21_v46 = vld [vmem:[%s968_s1 + $0x38] sm:$0xff] }
  0x10   :  { %v68_v43 = vld [vmem:[%s966_s2 + $0xb0] sm:$0xff]  ;;  %v33_v47 = vld [vmem:[%s968_s1 + $0x98] sm:$0xff]  ;;  %v22_v49 = vld [vmem:[%s968_s1 + $0x40] sm:$0xff] }
  0x11   :  { %v69_v48 = vld [vmem:[%s966_s2 + $0xb8] sm:$0xff]  ;;  %v34_v50 = vld [vmem:[%s968_s1 + $0xa0] sm:$0xff]  ;;  %v23_v51 = vld [vmem:[%s968_s1 + $0x48] sm:$0xff] }
  0x12   :  { %v35_v52 = vld [vmem:[%s968_s1 + $0xa8] sm:$0xff]  ;;  %v24_v53 = vld [vmem:[%s968_s1 + $0x50] sm:$0xff]  ;;  %v25_v55 = vld [vmem:[%s968_s1 + $0x58] sm:$0xff] }
  0x13   :  { %494 = vmatmul.msk.f32.gmra.mxu0 %vm190_vm0, %v15_v16  ;;  %506 = vmatmul.msk.f32.gmra.mxu2 %vm190_vm0, %v27_v17  ;;  %v36_v54 = vld [vmem:[%s968_s1 + $0xb0] sm:$0xff]  ;;  %v37_v56 = vld [vmem:[%s968_s1 + $0xb8] sm:$0xff] }
  0x14   :  { %518 = vmatmul.msk.f32.gmra.mxu1 %vm190_vm0, %v15_v16  ;;  %530 = vmatmul.msk.f32.gmra.mxu3 %vm190_vm0, %v27_v17 }
  0x15   :  { %107 = vperm.xlu1 %551, %v53_v18   ;;  %102 = vperm.xlu0 %550, %v52_v19  }
  0x17   :  { %97 = vperm.xlu2 %552, %v51_v20  }
  0x1b   :  { %495 = vmatmul.msk.f32.gmra.mxu0 %vm190_vm0, %v16_v21  ;;  %507 = vmatmul.msk.f32.gmra.mxu2 %vm190_vm0, %v28_v22 }
  0x1c   :  { %519 = vmatmul.msk.f32.gmra.mxu1 %vm190_vm0, %v16_v21  ;;  %531 = vmatmul.msk.f32.gmra.mxu3 %vm190_vm0, %v28_v22 }
  0x1d   :  { %122 = vperm.xlu1 %551, %v56_v23   ;;  %117 = vperm.xlu0 %550, %v55_v24  }
  0x1f   :  { %112 = vperm.xlu2 %552, %v54_v25  }
  0x23   :  { %496 = vmatmul.msk.f32.gmra.mxu0 %vm190_vm0, %v17_v26  ;;  %508 = vmatmul.msk.f32.gmra.mxu2 %vm190_vm0, %v29_v27 }
  0x24   :  { %520 = vmatmul.msk.f32.gmra.mxu1 %vm190_vm0, %v17_v26  ;;  %532 = vmatmul.msk.f32.gmra.mxu3 %vm190_vm0, %v29_v27 }
  0x25   :  { %137 = vperm.xlu1 %551, %v59_v28   ;;  %132 = vperm.xlu0 %550, %v58_v29  }
  0x27   :  { %127 = vperm.xlu2 %552, %v57_v30  }
  0x2b   :  { %497 = vmatmul.msk.f32.gmra.mxu0 %vm190_vm0, %v18_v31  ;;  %509 = vmatmul.msk.f32.gmra.mxu2 %vm190_vm0, %v30_v32 }
  0x2c   :  { %521 = vmatmul.msk.f32.gmra.mxu1 %vm190_vm0, %v18_v31  ;;  %533 = vmatmul.msk.f32.gmra.mxu3 %vm190_vm0, %v30_v32 }
  0x2d   :  { %152 = vperm.xlu1 %551, %v62_v33   ;;  %147 = vperm.xlu0 %550, %v61_v34  }
  0x2f   :  { %142 = vperm.xlu2 %552, %v60_v35  }
  0x33   :  { %498 = vmatmul.msk.f32.gmra.mxu0 %vm190_vm0, %v19_v36  ;;  %510 = vmatmul.msk.f32.gmra.mxu2 %vm190_vm0, %v31_v37 }
  0x34   :  { %522 = vmatmul.msk.f32.gmra.mxu1 %vm190_vm0, %v19_v36  ;;  %534 = vmatmul.msk.f32.gmra.mxu3 %vm190_vm0, %v31_v37 }
  0x35   :  { %167 = vperm.xlu1 %551, %v65_v38   ;;  %162 = vperm.xlu0 %550, %v64_v39  }
  0x37   :  { %157 = vperm.xlu2 %552, %v63_v40  }
  0x3b   :  { %499 = vmatmul.msk.f32.gmra.mxu0 %vm190_vm0, %v20_v41  ;;  %511 = vmatmul.msk.f32.gmra.mxu2 %vm190_vm0, %v32_v42 }
  0x3c   :  { %523 = vmatmul.msk.f32.gmra.mxu1 %vm190_vm0, %v20_v41  ;;  %535 = vmatmul.msk.f32.gmra.mxu3 %vm190_vm0, %v32_v42 }
  0x3d   :  { %182 = vperm.xlu1 %551, %v68_v43   ;;  %177 = vperm.xlu0 %550, %v67_v44  }
  0x3f   :  { %172 = vperm.xlu2 %552, %v66_v45  }
  0x43   :  { %500 = vmatmul.msk.f32.gmra.mxu0 %vm190_vm0, %v21_v46  ;;  %512 = vmatmul.msk.f32.gmra.mxu2 %vm190_vm0, %v33_v47 }
  0x44   :  { %524 = vmatmul.msk.f32.gmra.mxu1 %vm190_vm0, %v21_v46  ;;  %536 = vmatmul.msk.f32.gmra.mxu3 %vm190_vm0, %v33_v47 }
  0x47   :  { %187 = vperm.xlu2 %552, %v69_v48  }
  0x4b   :  { %501 = vmatmul.msk.f32.gmra.mxu0 %vm190_vm0, %v22_v49  ;;  %513 = vmatmul.msk.f32.gmra.mxu2 %vm190_vm0, %v34_v50 }
  0x4c   :  { %525 = vmatmul.msk.f32.gmra.mxu1 %vm190_vm0, %v22_v49  ;;  %537 = vmatmul.msk.f32.gmra.mxu3 %vm190_vm0, %v34_v50 }
  0x53   :  { %502 = vmatmul.msk.f32.gmra.mxu0 %vm190_vm0, %v23_v51  ;;  %514 = vmatmul.msk.f32.gmra.mxu2 %vm190_vm0, %v35_v52 }
  0x54   :  { %526 = vmatmul.msk.f32.gmra.mxu1 %vm190_vm0, %v23_v51  ;;  %538 = vmatmul.msk.f32.gmra.mxu3 %vm190_vm0, %v35_v52 }
  0x5b   :  { %503 = vmatmul.msk.f32.gmra.mxu0 %vm190_vm0, %v24_v53  ;;  %515 = vmatmul.msk.f32.gmra.mxu2 %vm190_vm0, %v36_v54 }
  0x5c   :  { %527 = vmatmul.msk.f32.gmra.mxu1 %vm190_vm0, %v24_v53  ;;  %539 = vmatmul.msk.f32.gmra.mxu3 %vm190_vm0, %v36_v54 }
  0x63   :  { %504 = vmatmul.msk.f32.gmra.mxu0 %vm190_vm0, %v25_v55  ;;  %516 = vmatmul.msk.f32.gmra.mxu2 %vm190_vm0, %v37_v56 }
  0x64   :  { %528 = vmatmul.msk.f32.gmra.mxu1 %vm190_vm0, %v25_v55  ;;  %540 = vmatmul.msk.f32.gmra.mxu3 %vm190_vm0, %v37_v56 }
  0x69   :  { %v790_v59 = vpop.permute.xlu2 %92 }
  0x71   :  { %v792_v62 = vpop.permute.xlu2 %97 }
  0x74   :  { %v83_v57 = vpop.permute.xlu1 %82  ;;  %v73_v58 = vpop.permute.xlu0 %72 }
  0x79   :  { %v798_v4 = vpop.permute.xlu2 %112 }
  0x7f   :  { %v88_v60 = vpop.permute.xlu1 %87  ;;  %v78_v61 = vpop.permute.xlu0 %77 }
  0x81   :  { %v813_v14 = vpop.permute.xlu2 %127 }
  0x87   :  { %v794_v63 = vpop.permute.xlu1 %107  ;;  %v796_v0 = vpop.permute.xlu0 %102 }
  0x88   :  { %v280_v1 = vpop.f32.mrf.mxu0 }
  0x89   :  { %v281_v2 = vadd.f32 %v280_v1, %v73_v58  ;;  %v369_v3 = vpop.f32.mrf.mxu1  ;;  %v143_v27 = vpop.permute.xlu2 %142 }
  0x8a   :  { %v370_v5 = vadd.f32 %v369_v3, %v73_v58 }
  0x8b   :  { %441 = vst [vmem:[%s969_s3] sm:$0xff] %v281_v2 }
  0x8c   :  { %442 = vst [vmem:[%s969_s3 + $0x8] sm:$0xff] %v370_v5 }
  0x8e   :  { %v316_v6 = vpop.f32.mrf.mxu2 }
  0x8f   :  { %v806_v7 = vpop.permute.xlu1 %122  ;;  %v808_v8 = vpop.permute.xlu0 %117 }
  0x90   :  { %v405_v9 = vpop.f32.mrf.mxu3  ;;  %v283_v10 = vpop.f32.mrf.mxu0 }
  0x91   :  { %v284_v11 = vadd.f32 %v283_v10, %v78_v61  ;;  %v372_v12 = vpop.f32.mrf.mxu1  ;;  %v158_v54 = vpop.permute.xlu2 %157 }
  0x92   :  { %v373_v13 = vadd.f32 %v372_v12, %v78_v61 }
  0x93   :  { %443 = vst [vmem:[%s969_s3 + $0x10] sm:$0xff] %v284_v11 }
  0x94   :  { %444 = vst [vmem:[%s969_s3 + $0x18] sm:$0xff] %v373_v13 }
  0x96   :  { %v319_v15 = vpop.f32.mrf.mxu2 }
  0x97   :  { %v138_v16 = vpop.permute.xlu1 %137  ;;  %v133_v17 = vpop.permute.xlu0 %132 }
  0x98   :  { %v317_v18 = vadd.f32 %v316_v6, %v133_v17  ;;  %v406_v19 = vadd.f32 %v405_v9, %v133_v17  ;;  %v320_v20 = vadd.f32 %v319_v15, %v138_v16  ;;  %v408_v21 = vpop.f32.mrf.mxu3  ;;  %v286_v22 = vpop.f32.mrf.mxu0 }
  0x99   :  { %v409_v23 = vadd.f32 %v408_v21, %v138_v16  ;;  %v375_v24 = vpop.f32.mrf.mxu1  ;;  %v287_v25 = vadd.f32 %v286_v22, %v83_v57  ;;  %v173_v21 = vpop.permute.xlu2 %172 }
  0x9a   :  { %465 = vst [vmem:[%s969_s3 + $0xc0] sm:$0xff] %v317_v18  ;;  %v376_v26 = vadd.f32 %v375_v24, %v83_v57 }
  0x9b   :  { %466 = vst [vmem:[%s969_s3 + $0xc8] sm:$0xff] %v406_v19 }
  0x9c   :  { %467 = vst [vmem:[%s969_s3 + $0xd0] sm:$0xff] %v320_v20 }
  0x9d   :  { %468 = vst [vmem:[%s969_s3 + $0xd8] sm:$0xff] %v409_v23 }
  0x9e   :  { %445 = vst [vmem:[%s969_s3 + $0x20] sm:$0xff] %v287_v25  ;;  %v322_v28 = vpop.f32.mrf.mxu2 }
  0x9f   :  { %446 = vst [vmem:[%s969_s3 + $0x28] sm:$0xff] %v376_v26  ;;  %v323_v29 = vadd.f32 %v322_v28, %v143_v27  ;;  %v148_v36 = vpop.permute.xlu0 %147  ;;  %v153_v45 = vpop.permute.xlu1 %152 }
  0xa0   :  { %v411_v30 = vpop.f32.mrf.mxu3  ;;  %v289_v31 = vpop.f32.mrf.mxu0 }
  0xa1   :  { %469 = vst [vmem:[%s969_s3 + $0xe0] sm:$0xff] %v323_v29  ;;  %v412_v32 = vadd.f32 %v411_v30, %v143_v27  ;;  %v290_v33 = vadd.f32 %v289_v31, %v88_v60  ;;  %v378_v34 = vpop.f32.mrf.mxu1 }
  0xa2   :  { %v379_v35 = vadd.f32 %v378_v34, %v88_v60 }
  0xa3   :  { %470 = vst [vmem:[%s969_s3 + $0xe8] sm:$0xff] %v412_v32 }
  0xa4   :  { %447 = vst [vmem:[%s969_s3 + $0x30] sm:$0xff] %v290_v33 }
  0xa5   :  { %448 = vst [vmem:[%s969_s3 + $0x38] sm:$0xff] %v379_v35 }
  0xa6   :  { %v325_v37 = vpop.f32.mrf.mxu2 }
  0xa7   :  { %v326_v38 = vadd.f32 %v325_v37, %v148_v36  ;;  %v163_v1 = vpop.permute.xlu0 %162  ;;  %v168_v12 = vpop.permute.xlu1 %167 }
  0xa8   :  { %v414_v39 = vpop.f32.mrf.mxu3  ;;  %v292_v40 = vpop.f32.mrf.mxu0 }
  0xa9   :  { %471 = vst [vmem:[%s969_s3 + $0xf0] sm:$0xff] %v326_v38  ;;  %v415_v41 = vadd.f32 %v414_v39, %v148_v36  ;;  %v293_v42 = vadd.f32 %v292_v40, %v790_v59  ;;  %v381_v43 = vpop.f32.mrf.mxu1 }
  0xaa   :  { %v382_v44 = vadd.f32 %v381_v43, %v790_v59 }
  0xab   :  { %472 = vst [vmem:[%s969_s3 + $0xf8] sm:$0xff] %v415_v41 }
  0xac   :  { %449 = vst [vmem:[%s969_s3 + $0x40] sm:$0xff] %v293_v42 }
  0xad   :  { %450 = vst [vmem:[%s969_s3 + $0x48] sm:$0xff] %v382_v44 }
  0xae   :  { %v328_v46 = vpop.f32.mrf.mxu2 }
  0xaf   :  { %v329_v47 = vadd.f32 %v328_v46, %v153_v45  ;;  %v178_v29 = vpop.permute.xlu0 %177  ;;  %v183_v37 = vpop.permute.xlu1 %182 }
  0xb0   :  { %v417_v48 = vpop.f32.mrf.mxu3  ;;  %v295_v49 = vpop.f32.mrf.mxu0 }
  0xb1   :  { %473 = vst [vmem:[%s969_s3 + $0x100] sm:$0xff] %v329_v47  ;;  %v418_v50 = vadd.f32 %v417_v48, %v153_v45  ;;  %v296_v51 = vadd.f32 %v295_v49, %v792_v62  ;;  %v384_v52 = vpop.f32.mrf.mxu1  ;;  %v188_v45 = vpop.permute.xlu2 %187 }
  0xb2   :  { %v385_v53 = vadd.f32 %v384_v52, %v792_v62 }
  0xb3   :  { %474 = vst [vmem:[%s969_s3 + $0x108] sm:$0xff] %v418_v50 }
  0xb4   :  { %451 = vst [vmem:[%s969_s3 + $0x50] sm:$0xff] %v296_v51 }
  0xb5   :  { %452 = vst [vmem:[%s969_s3 + $0x58] sm:$0xff] %v385_v53 }
  0xb6   :  { %v331_v55 = vpop.f32.mrf.mxu2 }
  0xb7   :  { %v332_v56 = vadd.f32 %v331_v55, %v158_v54 }
  0xb8   :  { %v420_v57 = vpop.f32.mrf.mxu3  ;;  %v298_v58 = vpop.f32.mrf.mxu0 }
  0xb9   :  { %475 = vst [vmem:[%s969_s3 + $0x110] sm:$0xff] %v332_v56  ;;  %v421_v59 = vadd.f32 %v420_v57, %v158_v54  ;;  %v299_v60 = vadd.f32 %v298_v58, %v796_v0  ;;  %v387_v61 = vpop.f32.mrf.mxu1 }
  0xba   :  { %v388_v62 = vadd.f32 %v387_v61, %v796_v0 }
  0xbb   :  { %476 = vst [vmem:[%s969_s3 + $0x118] sm:$0xff] %v421_v59 }
  0xbc   :  { %453 = vst [vmem:[%s969_s3 + $0x60] sm:$0xff] %v299_v60 }
  0xbd   :  { %454 = vst [vmem:[%s969_s3 + $0x68] sm:$0xff] %v388_v62 }
  0xbe   :  { %v334_v2 = vpop.f32.mrf.mxu2 }
  0xbf   :  { %v335_v3 = vadd.f32 %v334_v2, %v163_v1 }
  0xc0   :  { %v423_v5 = vpop.f32.mrf.mxu3  ;;  %v301_v6 = vpop.f32.mrf.mxu0 }
  0xc1   :  { %477 = vst [vmem:[%s969_s3 + $0x120] sm:$0xff] %v335_v3  ;;  %v424_v0 = vadd.f32 %v423_v5, %v163_v1  ;;  %v302_v9 = vadd.f32 %v301_v6, %v794_v63  ;;  %v390_v10 = vpop.f32.mrf.mxu1 }
  0xc2   :  { %v391_v11 = vadd.f32 %v390_v10, %v794_v63 }
  0xc3   :  { %478 = vst [vmem:[%s969_s3 + $0x128] sm:$0xff] %v424_v0 }
  0xc4   :  { %455 = vst [vmem:[%s969_s3 + $0x70] sm:$0xff] %v302_v9 }
  0xc5   :  { %456 = vst [vmem:[%s969_s3 + $0x78] sm:$0xff] %v391_v11 }
  0xc6   :  { %v337_v13 = vpop.f32.mrf.mxu2 }
  0xc7   :  { %v338_v15 = vadd.f32 %v337_v13, %v168_v12 }
  0xc8   :  { %v426_v16 = vpop.f32.mrf.mxu3  ;;  %v304_v17 = vpop.f32.mrf.mxu0 }
  0xc9   :  { %479 = vst [vmem:[%s969_s3 + $0x130] sm:$0xff] %v338_v15  ;;  %v427_v63 = vadd.f32 %v426_v16, %v168_v12  ;;  %v305_v18 = vadd.f32 %v304_v17, %v798_v4  ;;  %v393_v19 = vpop.f32.mrf.mxu1 }
  0xca   :  { %v394_v20 = vadd.f32 %v393_v19, %v798_v4 }
  0xcb   :  { %480 = vst [vmem:[%s969_s3 + $0x138] sm:$0xff] %v427_v63 }
  0xcc   :  { %457 = vst [vmem:[%s969_s3 + $0x80] sm:$0xff] %v305_v18 }
  0xcd   :  { %458 = vst [vmem:[%s969_s3 + $0x88] sm:$0xff] %v394_v20 }
  0xce   :  { %v340_v22 = vpop.f32.mrf.mxu2 }
  0xcf   :  { %v341_v23 = vadd.f32 %v340_v22, %v173_v21 }
  0xd0   :  { %v429_v24 = vpop.f32.mrf.mxu3  ;;  %v307_v25 = vpop.f32.mrf.mxu0 }
  0xd1   :  { %481 = vst [vmem:[%s969_s3 + $0x140] sm:$0xff] %v341_v23  ;;  %v430_v4 = vadd.f32 %v429_v24, %v173_v21  ;;  %v308_v26 = vadd.f32 %v307_v25, %v808_v8  ;;  %v396_v27 = vpop.f32.mrf.mxu1 }
  0xd2   :  { %v397_v28 = vadd.f32 %v396_v27, %v808_v8 }
  0xd3   :  { %482 = vst [vmem:[%s969_s3 + $0x148] sm:$0xff] %v430_v4 }
  0xd4   :  { %459 = vst [vmem:[%s969_s3 + $0x90] sm:$0xff] %v308_v26 }
  0xd5   :  { %460 = vst [vmem:[%s969_s3 + $0x98] sm:$0xff] %v397_v28 }
  0xd6   :  { %v343_v30 = vpop.f32.mrf.mxu2 }
  0xd7   :  { %v344_v31 = vadd.f32 %v343_v30, %v178_v29 }
  0xd8   :  { %v432_v32 = vpop.f32.mrf.mxu3  ;;  %v310_v33 = vpop.f32.mrf.mxu0 }
  0xd9   :  { %483 = vst [vmem:[%s969_s3 + $0x150] sm:$0xff] %v344_v31  ;;  %v433_v8 = vadd.f32 %v432_v32, %v178_v29  ;;  %v311_v34 = vadd.f32 %v310_v33, %v806_v7  ;;  %v399_v35 = vpop.f32.mrf.mxu1 }
  0xda   :  { %v400_v36 = vadd.f32 %v399_v35, %v806_v7 }
  0xdb   :  { %484 = vst [vmem:[%s969_s3 + $0x158] sm:$0xff] %v433_v8 }
  0xdc   :  { %461 = vst [vmem:[%s969_s3 + $0xa0] sm:$0xff] %v311_v34 }
  0xdd   :  { %462 = vst [vmem:[%s969_s3 + $0xa8] sm:$0xff] %v400_v36 }
  0xde   :  { %v346_v38 = vpop.f32.mrf.mxu2 }
  0xdf   :  { %v347_v39 = vadd.f32 %v346_v38, %v183_v37 }
  0xe0   :  { %v435_v40 = vpop.f32.mrf.mxu3  ;;  %v313_v41 = vpop.f32.mrf.mxu0 }
  0xe1   :  { %485 = vst [vmem:[%s969_s3 + $0x160] sm:$0xff] %v347_v39  ;;  %v436_v7 = vadd.f32 %v435_v40, %v183_v37  ;;  %v314_v42 = vadd.f32 %v313_v41, %v813_v14  ;;  %v402_v43 = vpop.f32.mrf.mxu1 }
  0xe2   :  { %v403_v44 = vadd.f32 %v402_v43, %v813_v14 }
  0xe3   :  { %486 = vst [vmem:[%s969_s3 + $0x168] sm:$0xff] %v436_v7 }
  0xe4   :  { %463 = vst [vmem:[%s969_s3 + $0xb0] sm:$0xff] %v314_v42 }
  0xe5   :  { %464 = vst [vmem:[%s969_s3 + $0xb8] sm:$0xff] %v403_v44 }
  0xe6   :  { %v349_v46 = vpop.f32.mrf.mxu2 }
  0xe7   :  { %v350_v47 = vadd.f32 %v349_v46, %v188_v45 }
  0xe8   :  { %v438_v48 = vpop.f32.mrf.mxu3 }
  0xe9   :  { %487 = vst [vmem:[%s969_s3 + $0x170] sm:$0xff] %v350_v47  ;;  %v439_v14 = vadd.f32 %v438_v48, %v188_v45 }
  0xeb   :  { %488 = vst [vmem:[%s969_s3 + $0x178] sm:$0xff] %v439_v14 }

</bundles_post_ra>
